<compile_context>
chip_gen: v7x
topology: tpu7x:2x2x1
jax: 0.10.0
libtpu: 0.0.40
codegen_flags: <defaults>
</compile_context>

<pallas_src>
import functools
import math

import jax
import jax.numpy as jnp
from jax.experimental import pallas as pl
from jax.experimental.pallas import tpu as pltpu


def _rmsnorm_kernel(x_ref, w_ref, o_ref, *, eps, inv_dim):
    # x_ref: (TILE_ROWS, DIM_P) io dtype, w_ref: (1, DIM_P) io dtype,
    # o_ref: (TILE_ROWS, DIM_P) io dtype.
    x = x_ref[...].astype(jnp.float32)
    # Padded lanes (if any) are zero, so the sum equals the sum over the true
    # dim; multiply by 1/true_dim to match mean(-1, keepdim=True).
    ms = jnp.sum(x * x, axis=-1, keepdims=True) * inv_dim
    scale = jax.lax.rsqrt(ms + eps)
    # Cast the normalized value to the I/O dtype before the weight multiply
    # (reference semantics); the final multiply runs in the I/O dtype.
    normed = (x * scale).astype(o_ref.dtype)
    o_ref[...] = normed * w_ref[...]


def _round_up(a, b):
    return ((a + b - 1) // b) * b


# Sublane packing per element size (f32 -> 8, bf16 -> 16, int8/fp8 -> 32).
_SUBLANE_PACK = {4: 8, 2: 16, 1: 32}


@functools.lru_cache(maxsize=1)
def _hw_params():
    """Generation-dependent tiling/VMEM parameters (safe fallbacks)."""
    vmem_cap = 128 * 1024 * 1024
    try:
        info = pltpu.get_tpu_info()
        vmem_cap = int(getattr(info, "vmem_capacity_bytes", vmem_cap)) or vmem_cap
    except Exception:
        pass
    if vmem_cap <= 64 * 1024 * 1024:
        # v7x-like: 64 MiB VMEM per TC, 2 TensorCores per chip.
        return dict(
            num_cores=2,
            min_grid=4,                              # even, >= 4 -> balanced TC split
            block_target_bytes=4 * 1024 * 1024,
            vmem_budget_bytes=30 * 1024 * 1024,      # in/out double-buffer + f32 temps
            vmem_limit_bytes=48 * 1024 * 1024,       # ~25% headroom below physical
        )
    # v5e / v6e: 128 MiB VMEM, single TensorCore -> bigger blocks, few steps.
    return dict(
        num_cores=1,
        min_grid=3,                                  # just enough to pipeline DMAs
        block_target_bytes=8 * 1024 * 1024,
        vmem_budget_bytes=64 * 1024 * 1024,
        vmem_limit_bytes=96 * 1024 * 1024,
    )


def _auto_row_tile(rows, dim_p, itemsize, pack, hw):
    """Bytes-based row tile for a pure HBM-bandwidth op."""
    per_row_in = dim_p * itemsize
    # 2x input + 2x output (double-buffered blocks) + ~3 f32 temporaries.
    per_row_vmem = dim_p * (4 * itemsize + 12)
    cap = min(hw["block_target_bytes"] // per_row_in,
              hw["vmem_budget_bytes"] // per_row_vmem)
    row_tile = max(pack, (cap // pack) * pack)
    # Never exceed what the input provides (rounded down to the pack size so
    # blocks stay (8,128)-legal; the last block may still be partial).
    row_tile = min(row_tile, max(pack, (rows // pack) * pack))
    # Keep enough grid steps to pipeline DMAs and (on v7x) split evenly across
    # the two TensorCores, but only when the input is big enough to care.
    nsteps = pl.cdiv(rows, row_tile)
    if nsteps > 1:
        nsteps = max(nsteps, hw["min_grid"])
        rem = nsteps % hw["num_cores"]
        if rem:
            nsteps += hw["num_cores"] - rem
        row_tile = max(pack, _round_up(pl.cdiv(rows, nsteps), pack))
    return row_tile


def rmsnorm(x, weight, eps=1e-6, *, row_tile=None):
    """RMSNorm over the last axis of x. x: (..., dim), weight: (dim,)."""
    orig_shape = x.shape
    dim = orig_shape[-1]
    rows = int(math.prod(orig_shape[:-1])) if len(orig_shape) > 1 else 1
    x2d = x.reshape(rows, dim)

    itemsize = jnp.dtype(x.dtype).itemsize
    pack = _SUBLANE_PACK.get(itemsize, 8)
    hw = _hw_params()

    # Lane-dense last axis: pad (zeros) only when dim is not a multiple of 128
    # (real model dims already are; only tiny demo dims pay this).
    dim_p = _round_up(dim, 128)
    pad_c = dim_p - dim
    if pad_c:
        x2d = jnp.pad(x2d, ((0, 0), (0, pad_c)))

    # Weight in the I/O dtype: the final multiply happens post-cast (reference
    # semantics) and in the narrow dtype on v6e/v7x.
    w = weight.astype(x.dtype).reshape(1, dim)
    if pad_c:
        w = jnp.pad(w, ((0, 0), (0, pad_c)))

    if row_tile is None:
        row_tile = _auto_row_tile(rows, dim_p, itemsize, pack, hw)
    else:
        row_tile = max(pack, (int(row_tile) // pack) * pack)
    if rows <= pack:
        # Full-extent row block: legal regardless of sublane packing, and
        # avoids an oversized partial block for tiny inputs.
        row_tile = rows

    # No row padding: ragged last block is handled by Pallas partial-block
    # masking (garbage rows are computed but never written back).
    grid = (pl.cdiv(rows, row_tile),)

    out = pl.pallas_call(
        functools.partial(_rmsnorm_kernel, eps=eps, inv_dim=1.0 / dim),
        out_shape=jax.ShapeDtypeStruct((rows, dim_p), x.dtype),
        grid_spec=pltpu.PrefetchScalarGridSpec(
            num_scalar_prefetch=0,
            grid=grid,
            in_specs=[
                pl.BlockSpec((row_tile, dim_p), lambda i: (i, 0)),
                pl.BlockSpec((1, dim_p), lambda i: (0, 0)),
            ],
            out_specs=pl.BlockSpec((row_tile, dim_p), lambda i: (i, 0)),
        ),
        compiler_params=pltpu.CompilerParams(
            dimension_semantics=("parallel",),
            vmem_limit_bytes=hw["vmem_limit_bytes"],
        ),
    )(x2d, w)

    if pad_c:
        out = out[:, :dim]
    return out.reshape(orig_shape)


def rmsnorm_ref(x, weight, eps=1e-6):
    xf = x.astype(jnp.float32)
    ms = jnp.mean(xf * xf, axis=-1, keepdims=True)
    normed = (xf * jax.lax.rsqrt(ms + eps)).astype(x.dtype)
    return normed * weight.astype(x.dtype)


if __name__ == "__main__":
    key = jax.random.PRNGKey(0)
    batch, seq, dim = 2, 8, 32

    x = jax.random.normal(key, (batch, seq, dim), dtype=jnp.float32)
    # nn.Parameter(torch.ones(dim)) — deterministic init of ones.
    weight = jnp.ones((dim,), dtype=jnp.float32)

    y = rmsnorm(x, weight, eps=1e-6)
    y = jax.block_until_ready(y)

    y_ref = rmsnorm_ref(x, weight, eps=1e-6)
    assert y.shape == x.shape and y.dtype == x.dtype
    assert jnp.allclose(y, y_ref, atol=1e-5, rtol=1e-5), "mismatch vs reference"

    print("KERNEL_OK")
</pallas_src>

<mosaic_0001>
module attributes {stable_mosaic.version = 11 : i64} {
  func.func @_rmsnorm_kernel(%arg0: i32, %arg1: memref<16x128xf32, #tpu.memory_space<vmem>>, %arg2: memref<1x128xf32, #tpu.memory_space<vmem>>, %arg3: memref<16x128xf32, #tpu.memory_space<vmem>>) attributes {dimension_semantics = [#tpu.dimension_semantics<parallel>], iteration_bounds = array<i64: 1>, scalar_prefetch = 0 : i64, scratch_operands = 0 : i64, tpu.core_type = #tpu.core_type<tc>, window_params = [{transform_indices = @transform_0, window_bounds = array<i64: 16, 128>}, {pipeline_mode = #tpu.pipeline_mode<synchronous>, transform_indices = @transform_1, window_bounds = array<i64: 1, 128>}, {transform_indices = @transform_2, window_bounds = array<i64: 16, 128>}]} {
    %c0 = arith.constant 0 : index
    %c0_0 = arith.constant 0 : index
    %0 = vector.load %arg1[%c0, %c0_0] : memref<16x128xf32, #tpu.memory_space<vmem>>, vector<16x128xf32>
    %1 = arith.mulf %0, %0 : vector<16x128xf32>
    %cst = arith.constant dense<0.000000e+00> : vector<16xf32>
    %2 = vector.multi_reduction <add>, %1, %cst [1] : vector<16x128xf32> to vector<16xf32>
    %3 = vector.shape_cast %2 : vector<16xf32> to vector<16x1xf32>
    %cst_1 = arith.constant 3.125000e-02 : f32
    %4 = vector.broadcast %cst_1 : f32 to vector<16x1xf32>
    %5 = arith.mulf %3, %4 : vector<16x1xf32>
    %cst_2 = arith.constant 9.99999997E-7 : f32
    %6 = vector.broadcast %cst_2 : f32 to vector<16x1xf32>
    %7 = arith.addf %5, %6 : vector<16x1xf32>
    %8 = math.rsqrt %7 : vector<16x1xf32>
    %9 = vector.broadcast %8 : vector<16x1xf32> to vector<16x128xf32>
    %10 = arith.mulf %0, %9 : vector<16x128xf32>
    %c0_3 = arith.constant 0 : index
    %c0_4 = arith.constant 0 : index
    %11 = vector.load %arg2[%c0_3, %c0_4] : memref<1x128xf32, #tpu.memory_space<vmem>>, vector<1x128xf32>
    %12 = vector.broadcast %11 : vector<1x128xf32> to vector<16x128xf32>
    %13 = arith.mulf %10, %12 : vector<16x128xf32>
    %c0_5 = arith.constant 0 : index
    %c0_6 = arith.constant 0 : index
    %14 = vector.load %arg3[%c0_5, %c0_6] : memref<16x128xf32, #tpu.memory_space<vmem>>, vector<16x128xf32>
    tpu.vector_store %arg3[%c0_5, %c0_6], %13 {strides = array<i32>} : memref<16x128xf32, #tpu.memory_space<vmem>>, vector<16x128xf32>,
    return
  }
  func.func @transform_0(%arg0: i32) -> (i32, i32) {
    %c0_i32 = arith.constant 0 : i32
    %c0_i32_0 = arith.constant 0 : i32
    return %arg0, %c0_i32 : i32, i32
  }
  func.func @transform_1(%arg0: i32) -> (i32, i32) {
    %c0_i32 = arith.constant 0 : i32
    %c0_i32_0 = arith.constant 0 : i32
    %c0_i32_1 = arith.constant 0 : i32
    return %c0_i32, %c0_i32_0 : i32, i32
  }
  func.func @transform_2(%arg0: i32) -> (i32, i32) {
    %c0_i32 = arith.constant 0 : i32
    %c0_i32_0 = arith.constant 0 : i32
    return %arg0, %c0_i32 : i32, i32
  }
}

</mosaic_0001>

<bundles_post_ra>
// kernel: tpu_custom_call.1
= control target key start
LH: loop header
LB: loop body
LE: loop exit
PB: predicated region body
PF: predicated region fallthrough
CT: control target
= control target key end

     0   :  { %7 = vsyncpa [#allocation3], 0  ;;  %s227_s0 = inlined_call_operand.hbm [shape: f32[16,128], index: 0, kind: input, shape index: {}]   ;;  %s228_s1 = inlined_call_operand.hbm [shape: f32[1,128], index: 1, kind: input, shape index: {}]   ;;  %s229_s2 = inlined_call_operand.hbm [shape: f32[16,128], index: 2, kind: output, shape index: {}]  }
   0x1   :  { %8 = vsyncpa [#allocation6], 0 }
   0x2   :  { %9 = vsyncpa [#allocation4], 0  ;;  %s165_s9 = smov [#allocation2]   ;;  %s93_s13 = scalar_lea.hbm %s227_s0, 256 }
   0x3   :  { %s15_s10 = sshll.u32 %s165_s9, 4  ;;  %p94_p0 = scmp.ne.s32.totalorder %s227_s0, %s93_s13  ;;  %s16_s10 = int_to_ptr.vmem [resolvable:$true] %s15_s10 }
   0x4   :  { %p97_p1 = scmp.lt.u32.totalorder %s93_s13, %s227_s0 }
   0x6   :  { %p99_p2 = pnand %p97_p1, %p94_p0 }
   0x8   :  { %102 = shalt.err (!%p99_p2)
}
   0x9   :  { %s103_s18 = scalar_lea.vmem %s16_s10, 256  ;;  %p108_p4 = scmp.lt.s32.totalorder %s16_s10, %s16_s10 }
   0xa   :  { %p104_p3 = scmp.ne.s32.totalorder %s16_s10, %s103_s18  ;;  %p109_p5 = scmp.lt.s32.totalorder %s103_s18, %s103_s18 }
   0xc   :  { %p110_p6 = por %p109_p5, %p108_p4 }
   0xe   :  { %p111_p7 = pnand %p110_p6, %p104_p3 }
  0x10   :  { %114 = shalt.err (!%p111_p7)
}
  0x11   :  { %s166_s19 = smov 128   ;;  %s167_s20 = smov 8  }
  0x12   :  { %21 = dma.hbm_to_vmem [thread:$0]  %s227_s0, 256, %s16_s10, [#allocation3], %s166_s19, %s166_s19, %s167_s20  }
  0x13   :  { %s168_s23 = smov [#allocation5]   ;;  %s115_s27 = scalar_lea.hbm %s228_s1, 16 }
  0x14   :  { %s28_s24 = sshll.u32 %s168_s23, 4  ;;  %p116_p8 = scmp.ne.s32.totalorder %s228_s1, %s115_s27  ;;  %s29_s24 = int_to_ptr.vmem [resolvable:$true] %s28_s24 }
  0x15   :  { %p119_p9 = scmp.lt.u32.totalorder %s115_s27, %s228_s1 }
  0x17   :  { %p121_p10 = pnand %p119_p9, %p116_p8 }
  0x19   :  { %124 = shalt.err (!%p121_p10)
}
  0x1a   :  { %s125_s4 = scalar_lea.vmem %s29_s24, 16  ;;  %s129_s0 = scalar_lea.vmem %s29_s24, 32 }
  0x1b   :  { %p126_p11 = scmp.ne.s32.totalorder %s29_s24, %s125_s4  ;;  %p130_p12 = scmp.lt.s32.totalorder %s29_s24, %s29_s24 }
  0x1c   :  { %p131_p13 = scmp.lt.s32.totalorder %s129_s0, %s125_s4 }
  0x1e   :  { %p132_p0 = por %p131_p13, %p130_p12 }
  0x20   :  { %p133_p1 = pnand %p132_p0, %p126_p11 }
  0x22   :  { %136 = shalt.err (!%p133_p1)
}
  0x23   :  { %31 = dma.hbm_to_vmem [thread:$0]  %s228_s1, 16, %s29_s24, [#allocation6]  }
  0x24   :  { %159 = dma.done.wait [#allocation3], 256  }
  0x25   :  { %160 = vsyncadd [#allocation3], 4294967040 }
  0x26   :  { %161 = dma.done.wait [#allocation6], 16  }
  0x27   :  { %162 = vsyncadd [#allocation6], 4294967280  ;;  %v38_v0 = vld [vmem:[#allocation2] sm:$0xff]  ;;  %v39_v1 = vld [vmem:[#allocation2 + $0x8] sm:$0xff]  ;;  %s169_s1 = smov [#allocation7]  }
  0x28   :  { %v40_v2 = vmul.f32 %v38_v0, %v38_v0  ;;  %v41_v3 = vmul.f32 %v39_v1, %v39_v1  ;;  %v83_v11 = vld [vmem:[#allocation5] ss:$0 sm:$0xff]  ;;  %s70_s7 = sshll.u32 %s169_s1, 4  ;;  %s71_s7 = int_to_ptr.vmem [resolvable:$true] %s70_s7 }
  0x29   :  { %s137_s8 = scalar_lea.vmem %s71_s7, 256  ;;  %p142_p3 = scmp.lt.s32.totalorder %s71_s7, %s71_s7 }
  0x2a   :  { %42 = vadd.xlane.f32.xlu0 %v40_v2  ;;  %p138_p2 = scmp.ne.s32.totalorder %s71_s7, %s137_s8  ;;  %p143_p4 = scmp.lt.s32.totalorder %s137_s8, %s137_s8 }
  0x2c   :  { %p144_p5 = por %p143_p4, %p142_p3 }
  0x2e   :  { %44 = vadd.xlane.f32.xlu0 %v41_v3  ;;  %p145_p6 = pnand %p144_p5, %p138_p2 }
  0xb7   :  { %v43_v4 = vpop.xlane.xlu0 %42 }
  0xb8   :  { %v46_v5 = vmul.f32 0.03125, %v43_v4 }
  0xba   :  { %v48_v6 = vadd.f32 1e-06, %v46_v5 }
  0xbb   :  { %v45_v7 = vpop.xlane.xlu0 %44 }
  0xbc   :  { %89 = vrsqrt.f32 %v48_v6  ;;  %v47_v8 = vmul.f32 0.03125, %v45_v7 }
  0xbe   :  { %v49_v9 = vadd.f32 1e-06, %v47_v8 }
  0xc0   :  { %91 = vrsqrt.f32 %v49_v9 }
  0xc6   :  { %v90_v10 = vpop.eup %89 }
  0xc7   :  { %v52_v12 = vmul.f32 %v90_v10, %v38_v0 }
  0xc9   :  { %v61_v13 = vmul.f32 %v83_v11, %v52_v12 }
  0xca   :  { %v92_v14 = vpop.eup %91 }
  0xcb   :  { %v53_v15 = vmul.f32 %v92_v14, %v39_v1  ;;  %63 = vst [vmem:[#allocation7] sm:$0xff] %v61_v13 }
  0xcd   :  { %v62_v16 = vmul.f32 %v83_v11, %v53_v15 }
  0xcf   :  { %64 = vst [vmem:[#allocation7 + $0x8] sm:$0xff] %v62_v16 }
  0xd0   :  { %148 = shalt.err (!%p145_p6)
}
  0xd1   :  { %s149_s11 = scalar_lea.hbm %s229_s2, 256 }
  0xd2   :  { %p150_p7 = scmp.ne.s32.totalorder %s229_s2, %s149_s11  ;;  %p153_p8 = scmp.lt.u32.totalorder %s149_s11, %s229_s2 }
  0xd4   :  { %p155_p9 = pnand %p153_p8, %p150_p7 }
  0xd6   :  { %158 = shalt.err (!%p155_p9)
}
  0xd7   :  { %76 = dma.vmem_to_hbm [thread:$0]  %s71_s7, 256, %s229_s2, [#allocation4], %s166_s19, %s166_s19, %s167_s20  }
  0xd8   :  { %163 = dma.done.wait [#allocation4], 256  }
  0xd9   :  { %164 = vsyncadd [#allocation4], 4294967040 }
  0xda   :  { %80 = vsyncpa [#allocation3], 1 }
  0xdb   :  { %81 = vsyncpa [#allocation6], 1 }
  0xdc   :  { %82 = vsyncpa [#allocation4], 1 }

</bundles_post_ra>
